<compile_context>
chip_gen: v7x
topology: tpu7x:2x2x1
jax: 0.10.0
libtpu: 0.0.40
codegen_flags: <defaults>
</compile_context>

<pallas_src>
import functools
import math

import jax
import jax.numpy as jnp
import numpy as np
from jax.experimental import pallas as pl
from jax.experimental.pallas import tpu as pltpu


# ---------------------------------------------------------------------------
# Deterministic "parameter" construction — faithful to
# alias_free_torch.filter.kaiser_sinc_filter1d (the registered buffer in __init__).
# ---------------------------------------------------------------------------
def kaiser_sinc_filter1d(cutoff, half_width, kernel_size):
    even = kernel_size % 2 == 0
    half_size = kernel_size // 2
    delta_f = 4 * half_width
    A = 2.285 * (half_size - 1) * math.pi * delta_f + 7.95
    if A > 50.0:
        beta = 0.1102 * (A - 8.7)
    elif A >= 21.0:
        beta = 0.5842 * (A - 21.0) ** 0.4 + 0.07886 * (A - 21.0)
    else:
        beta = 0.0
    window = np.kaiser(kernel_size, beta)
    if even:
        time = np.arange(-half_size, half_size) + 0.5
    else:
        time = np.arange(kernel_size) - half_size
    if cutoff == 0:
        return np.zeros(kernel_size, np.float32)
    filt = 2 * cutoff * window * np.sinc(2 * cutoff * time)
    filt = filt / filt.sum()
    return filt.astype(np.float32)


HX = 6        # x halo columns needed on each side of a time tile (3 up-taps + 3 down-taps)
PEXT = 3      # phase-buffer extension on each side (down-conv halo)
HALO_W = 128  # lane-aligned width of the manually DMA'd halo blocks
MIN_STEPS = 8  # target minimum number of grid steps (pipelining / 2-core balance)


# ---------------------------------------------------------------------------
# Fused kernel: upsample (transposed depthwise conv, x2) -> activation ->
#               downsample (depthwise conv, stride 2)
# Constants below assume the 12-tap, ratio-2 filters and HX=6 / PEXT=3.
# ---------------------------------------------------------------------------
def _activation1d_kernel(*refs, Tt, Tlen, wu, wd, act, multi_t):
    if multi_t:
        (x_ref, xany_ref, o_ref,
         xs_ref, ae_ref, ao_ref, hl_ref, hr_ref, sem) = refs
    else:
        x_ref, o_ref, xs_ref, ae_ref, ao_ref = refs

    rows = x_ref.shape[0]
    j = pl.program_id(1)
    Wp = Tt + 2 * PEXT

    # ---- Stage the x window [t0-HX, t0+Tt+HX) into xs (single f32 cast), with
    #      replicate clamping at the global time edges. ------------------------------
    if multi_t:
        r0 = pl.program_id(0) * rows
        t0 = j * Tt
        # Clamped, 128-lane-aligned halo windows; edge tiles overwrite them below.
        l_start = jnp.maximum(t0 - HALO_W, 0)
        r_start = jnp.minimum(t0 + Tt, Tlen - HALO_W)
        cp_l = pltpu.make_async_copy(
            xany_ref.at[pl.ds(r0, rows), pl.ds(l_start, HALO_W)], hl_ref, sem.at[0])
        cp_r = pltpu.make_async_copy(
            xany_ref.at[pl.ds(r0, rows), pl.ds(r_start, HALO_W)], hr_ref, sem.at[1])
        cp_l.start()
        cp_r.start()

    xs_ref[:, HX:HX + Tt] = x_ref[...].astype(jnp.float32)

    def _left_edge():   # global left boundary: replicate x[0]
        xs_ref[:, 0:HX] = jnp.broadcast_to(xs_ref[:, HX:HX + 1], (rows, HX))

    def _right_edge():  # global right boundary: replicate x[T-1]
        xs_ref[:, HX + Tt:HX + Tt + HX] = jnp.broadcast_to(
            xs_ref[:, HX + Tt - 1:HX + Tt], (rows, HX))

    if multi_t:
        cp_l.wait()
        cp_r.wait()
        xs_ref[:, 0:HX] = hl_ref[:, HALO_W - HX:HALO_W].astype(jnp.float32)
        xs_ref[:, HX + Tt:HX + Tt + HX] = hr_ref[:, 0:HX].astype(jnp.float32)
        pl.when(j == 0)(_left_edge)
        pl.when(j == pl.num_programs(1) - 1)(_right_edge)
    else:
        _left_edge()
        _right_edge()

    # ---- Upsample: polyphase transposed conv (12 taps, stride 2). -------------------
    # Phase column p corresponds to global phase g = t0 - PEXT + p:
    #   y[2g]   = sum_r wu[2r+1] * x[g+2-r]  -> xs column p + 5 - r
    #   y[2g+1] = sum_r wu[2r]   * x[g+3-r]  -> xs column p + 6 - r
    # (up_ratio scale is already folded into wu.)
    # TODO(synk): taps are lane-offset slices; a sublane-major layout or an MXU banded
    #             matmul could remove the per-tap lane realignment (needs bundle dump).
    ae = wu[1] * xs_ref[:, 5:5 + Wp]
    ao = wu[0] * xs_ref[:, 6:6 + Wp]
    for r in range(1, 6):
        ae = ae + wu[2 * r + 1] * xs_ref[:, 5 - r:5 - r + Wp]
        ao = ao + wu[2 * r] * xs_ref[:, 6 - r:6 - r + Wp]

    # ---- Activation (elementwise) ----------------------------------------------------
    ae_ref[...] = act(ae)
    ao_ref[...] = act(ao)

    # ---- Boundary clamp of the activated phases (downsample's replicate pad). -------
    #   phases < 0   -> a[0]    = even phase at global 0   (column PEXT)
    #   phases >= T  -> a[2T-1] = odd  phase at global T-1 (column PEXT + Tt - 1)
    def _clamp_left():
        left = jnp.broadcast_to(ae_ref[:, PEXT:PEXT + 1], (rows, PEXT))
        ae_ref[:, 0:PEXT] = left
        ao_ref[:, 0:PEXT] = left

    def _clamp_right():
        right = jnp.broadcast_to(ao_ref[:, PEXT + Tt - 1:PEXT + Tt], (rows, PEXT))
        ae_ref[:, PEXT + Tt:Wp] = right
        ao_ref[:, PEXT + Tt:Wp] = right

    if multi_t:
        pl.when(j == 0)(_clamp_left)
        pl.when(j == pl.num_programs(1) - 1)(_clamp_right)
    else:
        _clamp_left()
        _clamp_right()

    # ---- Downsample: depthwise conv, stride 2, using wd[k] == wd[11-k] symmetry -----
    #   out[:, q] = sum_r wd[2r] * ( ao[:, q+r] + ae[:, q+6-r] )      (6 muls, 11 adds)
    acc = wd[0] * (ao_ref[:, 0:Tt] + ae_ref[:, 6:6 + Tt])
    for r in range(1, 6):
        acc = acc + wd[2 * r] * (ao_ref[:, r:r + Tt] + ae_ref[:, 6 - r:6 - r + Tt])

    o_ref[...] = acc.astype(o_ref.dtype)


# ---------------------------------------------------------------------------
# Sizing helpers (generation-aware VMEM budget, T-tile and row-block choice).
# ---------------------------------------------------------------------------
def _floor8(n):
    return (n // 8) * 8


def _round8(n):
    return ((n + 7) // 8) * 8


def _vmem_capacity_bytes():
    cap = None
    try:
        info = pltpu.get_tpu_info()
        cap = int(getattr(info, "vmem_capacity_bytes", 0)) or None
    except Exception:
        cap = None
    try:
        kind = jax.devices()[0].device_kind.lower()
    except Exception:
        kind = ""
    if cap is None:
        if ("v4" in kind) or ("v5" in kind) or ("v6" in kind):
            cap = 128 << 20
        else:
            cap = 64 << 20
    if "7" in kind:              # v7x: 64 MiB per TensorCore
        cap = min(cap, 64 << 20)
    return cap


def _per_row_bytes(Tt, itemsize, multi_t):
    b = 2 * itemsize * Tt              # double-buffered input block
    b += 2 * itemsize * Tt             # double-buffered output block
    b += 4 * (Tt + 2 * HX)             # xs scratch (f32)
    b += 2 * 4 * (Tt + 2 * PEXT)       # ae / ao scratch (f32)
    if multi_t:
        b += 2 * itemsize * HALO_W     # halo staging buffers
    return b


def _choose_t_tile(T, itemsize, budget, forced):
    if forced is not None and forced < T:
        assert T % forced == 0 and forced % 128 == 0, "t_tile must divide T and be a multiple of 128"
        return forced, True
    if 8 * _per_row_bytes(T, itemsize, False) <= budget:
        return T, False
    if T % 128 != 0:
        # TODO(synk): handle ragged T with in-kernel tail masking instead of one big tile.
        return T, False
    base = T // 128
    best = 128
    for d in range(1, base + 1):
        if base % d == 0:
            tt = 128 * d
            if 8 * _per_row_bytes(tt, itemsize, True) <= budget:
                best = max(best, tt)
    if best < T:
        return best, True
    return T, False


def _choose_rows(BC, nT, per_row, budget):
    BC8 = _round8(BC)
    units = BC8 // 8
    rows_max = max(8, _floor8(budget // max(per_row, 1)))
    nR_min = min(units, -(-MIN_STEPS // nT))                 # ceil(MIN_STEPS / nT)
    rows_cap = max(8, min(rows_max, _floor8(BC8 // nR_min)))
    # Prefer a row block that divides BC8 so no wrapper-side padding is needed.
    best = 8
    for d in range(1, units + 1):
        r = 8 * d
        if r > rows_cap:
            break
        if units % d == 0:
            best = r
    rows = best
    if 2 * rows < rows_cap and rows_cap >= 16:
        rows = rows_cap        # divisor too small -> too many steps; accept padding
    BCp = -(-BC8 // rows) * rows
    return rows, BCp


# ---------------------------------------------------------------------------
# Wrapper
# ---------------------------------------------------------------------------
def activation1d(x, activation=jnp.tanh, up_ratio=2, down_ratio=2, t_tile=None):
    """x: [B, C, T] -> [B, C, T] (same as the PyTorch Activation1d module)."""
    assert up_ratio == 2 and down_ratio == 2, "kernel derived for ratio 2 (12-tap filters)"
    B, C, T = x.shape
    BC = B * C
    itemsize = jnp.dtype(x.dtype).itemsize

    wu_np = kaiser_sinc_filter1d(0.5 / up_ratio, 0.6 / up_ratio, 12)
    wd_np = kaiser_sinc_filter1d(0.5 / down_ratio, 0.6 / down_ratio, 12)

    cap = _vmem_capacity_bytes()
    budget = max(16 << 20, min(cap // 2, cap - (16 << 20)))
    vmem_limit = max(budget + (8 << 20), min(int(cap * 0.8), cap - (8 << 20)))

    Tt, multi_t = _choose_t_tile(T, itemsize, budget, t_tile)
    nT = (T // Tt) if multi_t else 1
    per_row = _per_row_bytes(Tt, itemsize, multi_t)
    rows, BCp = _choose_rows(BC, nT, per_row, budget)
    nR = BCp // rows

    x2 = x.reshape(BC, T)
    if BCp != BC:
        # NOTE: full-tensor copy; only taken for ragged B*C shapes with no friendly divisor.
        # TODO(synk): replace with in-kernel tail-row masking.
        x2 = jnp.pad(x2, ((0, BCp - BC), (0, 0)))

    kernel = functools.partial(
        _activation1d_kernel,
        Tt=Tt,
        Tlen=T,
        # up_ratio scale of UpSample1d folded into the up-filter taps:
        wu=tuple(float(up_ratio) * float(v) for v in wu_np),
        wd=tuple(float(v) for v in wd_np),
        act=activation,
        multi_t=multi_t,
    )

    in_specs = [pl.BlockSpec((rows, Tt), lambda i, j: (i, j))]
    inputs = [x2]
    scratch = [
        pltpu.VMEM((rows, Tt + 2 * HX), jnp.float32),
        pltpu.VMEM((rows, Tt + 2 * PEXT), jnp.float32),
        pltpu.VMEM((rows, Tt + 2 * PEXT), jnp.float32),
    ]
    if multi_t:
        in_specs.append(pl.BlockSpec(memory_space=pl.ANY))   # raw HBM alias for halo DMAs
        inputs.append(x2)
        scratch += [
            pltpu.VMEM((rows, HALO_W), x.dtype),
            pltpu.VMEM((rows, HALO_W), x.dtype),
            pltpu.SemaphoreType.DMA((2,)),
        ]

    out = pl.pallas_call(
        kernel,
        out_shape=jax.ShapeDtypeStruct((BCp, T), x.dtype),
        grid_spec=pltpu.PrefetchScalarGridSpec(
            num_scalar_prefetch=0,
            grid=(nR, nT),
            in_specs=in_specs,
            out_specs=pl.BlockSpec((rows, Tt), lambda i, j: (i, j)),
            scratch_shapes=scratch,
        ),
        compiler_params=pltpu.CompilerParams(
            dimension_semantics=("parallel", "parallel"),
            vmem_limit_bytes=int(vmem_limit),
        ),
    )(*inputs)

    return out[:BC].reshape(B, C, T)


# ---------------------------------------------------------------------------
# Pure-numpy reference (direct PyTorch-semantics implementation) for checking.
# ---------------------------------------------------------------------------
def _ref_forward(x, act=np.tanh, up_ratio=2):
    x = np.asarray(x, np.float64)
    B, C, T = x.shape
    w = kaiser_sinc_filter1d(0.5 / up_ratio, 0.6 / up_ratio, 12).astype(np.float64)
    # UpSample1d: replicate pad 5, conv_transpose1d stride 2, *2, slice [15:-15]
    xp = np.pad(x, ((0, 0), (0, 0), (5, 5)), mode="edge")
    Lf = xp.shape[-1]
    yfull = np.zeros((B, C, (Lf - 1) * 2 + 12))
    for m in range(Lf):
        for k in range(12):
            yfull[..., 2 * m + k] += xp[..., m] * w[k]
    y = up_ratio * yfull[..., 15:15 + 2 * T]
    a = act(y)
    # DownSample1d: replicate pad (5, 6), conv1d stride 2
    ap = np.pad(a, ((0, 0), (0, 0), (5, 6)), mode="edge")
    out = np.zeros((B, C, T))
    for t in range(T):
        out[..., t] = np.sum(ap[..., 2 * t:2 * t + 12] * w, axis=-1)
    return out


if __name__ == "__main__":
    key = jax.random.PRNGKey(0)

    # Main check: B=2, C=4, T=16 (shapes implied by the module's NCW forward).
    B, C, T = 2, 4, 16
    x = jax.random.normal(key, (B, C, T), dtype=jnp.float32)
    out = jax.block_until_ready(activation1d(x, activation=jnp.tanh))
    ref = _ref_forward(np.asarray(x), act=np.tanh, up_ratio=2)
    np.testing.assert_allclose(np.asarray(out), ref, rtol=1e-4, atol=5e-5)

    # Secondary check: exercises row padding (B*C not a multiple of 8) and a
    # multi-row-block grid.
    B2, C2, T2 = 3, 5, 40
    x2 = jax.random.normal(jax.random.PRNGKey(1), (B2, C2, T2), dtype=jnp.float32)
    out2 = jax.block_until_ready(activation1d(x2, activation=jnp.tanh))
    ref2 = _ref_forward(np.asarray(x2), act=np.tanh, up_ratio=2)
    np.testing.assert_allclose(np.asarray(out2), ref2, rtol=1e-4, atol=5e-5)

    # Third check: forces the time-tiled path (3 tiles of 128 -> left edge, interior,
    # right edge) with the manual halo DMAs.
    B3, C3, T3 = 1, 8, 384
    x3 = jax.random.normal(jax.random.PRNGKey(2), (B3, C3, T3), dtype=jnp.float32)
    out3 = jax.block_until_ready(activation1d(x3, activation=jnp.tanh, t_tile=128))
    ref3 = _ref_forward(np.asarray(x3), act=np.tanh, up_ratio=2)
    np.testing.assert_allclose(np.asarray(out3), ref3, rtol=1e-4, atol=5e-5)

    print("KERNEL_OK")
</pallas_src>

<mosaic_0001>
module attributes {stable_mosaic.version = 11 : i64} {
  func.func @_activation1d_kernel(%arg0: i32, %arg1: i32, %arg2: memref<8x16xf32, #tpu.memory_space<vmem>>, %arg3: memref<8x16xf32, #tpu.memory_space<vmem>>, %arg4: memref<8x28xf32, #tpu.memory_space<vmem>>, %arg5: memref<8x22xf32, #tpu.memory_space<vmem>>, %arg6: memref<8x22xf32, #tpu.memory_space<vmem>>) attributes {dimension_semantics = [#tpu.dimension_semantics<parallel>, #tpu.dimension_semantics<parallel>], iteration_bounds = array<i64: 1, 1>, scalar_prefetch = 0 : i64, scratch_operands = 3 : i64, tpu.core_type = #tpu.core_type<tc>, window_params = [{transform_indices = @transform_0, window_bounds = array<i64: 8, 16>}, {transform_indices = @transform_1, window_bounds = array<i64: 8, 16>}]} {
    %c0 = arith.constant 0 : index
    %c0_0 = arith.constant 0 : index
    %0 = vector.load %arg2[%c0, %c0_0] : memref<8x16xf32, #tpu.memory_space<vmem>>, vector<8x16xf32>
    %c0_1 = arith.constant 0 : index
    %c6 = arith.constant 6 : index
    %1 = vector.load %arg4[%c0_1, %c6] : memref<8x28xf32, #tpu.memory_space<vmem>>, vector<8x16xf32>
    tpu.vector_store %arg4[%c0_1, %c6], %0 {strides = array<i32>} : memref<8x28xf32, #tpu.memory_space<vmem>>, vector<8x16xf32>,
    %c0_2 = arith.constant 0 : index
    %c6_3 = arith.constant 6 : index
    %2 = vector.load %arg4[%c0_2, %c6_3] : memref<8x28xf32, #tpu.memory_space<vmem>>, vector<8x1xf32>
    %3 = vector.shape_cast %2 : vector<8x1xf32> to vector<8x1xf32>
    %4 = vector.broadcast %3 : vector<8x1xf32> to vector<8x6xf32>
    %c0_4 = arith.constant 0 : index
    %c0_5 = arith.constant 0 : index
    %5 = vector.load %arg4[%c0_4, %c0_5] : memref<8x28xf32, #tpu.memory_space<vmem>>, vector<8x6xf32>
    tpu.vector_store %arg4[%c0_4, %c0_5], %4 {strides = array<i32>} : memref<8x28xf32, #tpu.memory_space<vmem>>, vector<8x6xf32>,
    %c0_6 = arith.constant 0 : index
    %c21 = arith.constant 21 : index
    %6 = vector.load %arg4[%c0_6, %c21] : memref<8x28xf32, #tpu.memory_space<vmem>>, vector<8x1xf32>
    %7 = vector.shape_cast %6 : vector<8x1xf32> to vector<8x1xf32>
    %8 = vector.broadcast %7 : vector<8x1xf32> to vector<8x6xf32>
    %c0_7 = arith.constant 0 : index
    %c22 = arith.constant 22 : index
    %9 = vector.load %arg4[%c0_7, %c22] : memref<8x28xf32, #tpu.memory_space<vmem>>, vector<8x6xf32>
    tpu.vector_store %arg4[%c0_7, %c22], %8 {strides = array<i32>} : memref<8x28xf32, #tpu.memory_space<vmem>>, vector<8x6xf32>,
    %c0_8 = arith.constant 0 : index
    %c5 = arith.constant 5 : index
    %10 = vector.load %arg4[%c0_8, %c5] : memref<8x28xf32, #tpu.memory_space<vmem>>, vector<8x22xf32>
    %cst = arith.constant 0.0187789276 : f32
    %11 = vector.broadcast %cst : f32 to vector<8x22xf32>
    %12 = arith.mulf %11, %10 : vector<8x22xf32>
    %c0_9 = arith.constant 0 : index
    %c6_10 = arith.constant 6 : index
    %13 = vector.load %arg4[%c0_9, %c6_10] : memref<8x28xf32, #tpu.memory_space<vmem>>, vector<8x22xf32>
    %cst_11 = arith.constant 0.00405793311 : f32
    %14 = vector.broadcast %cst_11 : f32 to vector<8x22xf32>
    %15 = arith.mulf %14, %13 : vector<8x22xf32>
    %c0_12 = arith.constant 0 : index
    %c4 = arith.constant 4 : index
    %16 = vector.load %arg4[%c0_12, %c4] : memref<8x28xf32, #tpu.memory_space<vmem>>, vector<8x22xf32>
    %cst_13 = arith.constant -0.115314752 : f32
    %17 = vector.broadcast %cst_13 : f32 to vector<8x22xf32>
    %18 = arith.mulf %17, %16 : vector<8x22xf32>
    %19 = arith.addf %12, %18 : vector<8x22xf32>
    %c0_14 = arith.constant 0 : index
    %c5_15 = arith.constant 5 : index
    %20 = vector.load %arg4[%c0_14, %c5_15] : memref<8x28xf32, #tpu.memory_space<vmem>>, vector<8x22xf32>
    %cst_16 = arith.constant -0.0510869287 : f32
    %21 = vector.broadcast %cst_16 : f32 to vector<8x22xf32>
    %22 = arith.mulf %21, %20 : vector<8x22xf32>
    %23 = arith.addf %15, %22 : vector<8x22xf32>
    %c0_17 = arith.constant 0 : index
    %c3 = arith.constant 3 : index
    %24 = vector.load %arg4[%c0_17, %c3] : memref<8x28xf32, #tpu.memory_space<vmem>>, vector<8x22xf32>
    %cst_18 = arith.constant 0.886419594 : f32
    %25 = vector.broadcast %cst_18 : f32 to vector<8x22xf32>
    %26 = arith.mulf %25, %24 : vector<8x22xf32>
    %27 = arith.addf %19, %26 : vector<8x22xf32>
    %c0_19 = arith.constant 0 : index
    %c4_20 = arith.constant 4 : index
    %28 = vector.load %arg4[%c0_19, %c4_20] : memref<8x28xf32, #tpu.memory_space<vmem>>, vector<8x22xf32>
    %cst_21 = arith.constant 0.257145226 : f32
    %29 = vector.broadcast %cst_21 : f32 to vector<8x22xf32>
    %30 = arith.mulf %29, %28 : vector<8x22xf32>
    %31 = arith.addf %23, %30 : vector<8x22xf32>
    %c0_22 = arith.constant 0 : index
    %c2 = arith.constant 2 : index
    %32 = vector.load %arg4[%c0_22, %c2] : memref<8x28xf32, #tpu.memory_space<vmem>>, vector<8x22xf32>
    %cst_23 = arith.constant 0.257145226 : f32
    %33 = vector.broadcast %cst_23 : f32 to vector<8x22xf32>
    %34 = arith.mulf %33, %32 : vector<8x22xf32>
    %35 = arith.addf %27, %34 : vector<8x22xf32>
    %c0_24 = arith.constant 0 : index
    %c3_25 = arith.constant 3 : index
    %36 = vector.load %arg4[%c0_24, %c3_25] : memref<8x28xf32, #tpu.memory_space<vmem>>, vector<8x22xf32>
    %cst_26 = arith.constant 0.886419594 : f32
    %37 = vector.broadcast %cst_26 : f32 to vector<8x22xf32>
    %38 = arith.mulf %37, %36 : vector<8x22xf32>
    %39 = arith.addf %31, %38 : vector<8x22xf32>
    %c0_27 = arith.constant 0 : index
    %c1 = arith.constant 1 : index
    %40 = vector.load %arg4[%c0_27, %c1] : memref<8x28xf32, #tpu.memory_space<vmem>>, vector<8x22xf32>
    %cst_28 = arith.constant -0.0510869287 : f32
    %41 = vector.broadcast %cst_28 : f32 to vector<8x22xf32>
    %42 = arith.mulf %41, %40 : vector<8x22xf32>
    %43 = arith.addf %35, %42 : vector<8x22xf32>
    %c0_29 = arith.constant 0 : index
    %c2_30 = arith.constant 2 : index
    %44 = vector.load %arg4[%c0_29, %c2_30] : memref<8x28xf32, #tpu.memory_space<vmem>>, vector<8x22xf32>
    %cst_31 = arith.constant -0.115314752 : f32
    %45 = vector.broadcast %cst_31 : f32 to vector<8x22xf32>
    %46 = arith.mulf %45, %44 : vector<8x22xf32>
    %47 = arith.addf %39, %46 : vector<8x22xf32>
    %c0_32 = arith.constant 0 : index
    %c0_33 = arith.constant 0 : index
    %48 = vector.load %arg4[%c0_32, %c0_33] : memref<8x28xf32, #tpu.memory_space<vmem>>, vector<8x22xf32>
    %cst_34 = arith.constant 0.00405793311 : f32
    %49 = vector.broadcast %cst_34 : f32 to vector<8x22xf32>
    %50 = arith.mulf %49, %48 : vector<8x22xf32>
    %51 = arith.addf %43, %50 : vector<8x22xf32>
    %c0_35 = arith.constant 0 : index
    %c1_36 = arith.constant 1 : index
    %52 = vector.load %arg4[%c0_35, %c1_36] : memref<8x28xf32, #tpu.memory_space<vmem>>, vector<8x22xf32>
    %cst_37 = arith.constant 0.0187789276 : f32
    %53 = vector.broadcast %cst_37 : f32 to vector<8x22xf32>
    %54 = arith.mulf %53, %52 : vector<8x22xf32>
    %55 = arith.addf %47, %54 : vector<8x22xf32>
    %56 = math.tanh %51 : vector<8x22xf32>
    %c0_38 = arith.constant 0 : index
    %c0_39 = arith.constant 0 : index
    %57 = vector.load %arg5[%c0_38, %c0_39] : memref<8x22xf32, #tpu.memory_space<vmem>>, vector<8x22xf32>
    tpu.vector_store %arg5[%c0_38, %c0_39], %56 {strides = array<i32>} : memref<8x22xf32, #tpu.memory_space<vmem>>, vector<8x22xf32>,
    %58 = math.tanh %55 : vector<8x22xf32>
    %c0_40 = arith.constant 0 : index
    %c0_41 = arith.constant 0 : index
    %59 = vector.load %arg6[%c0_40, %c0_41] : memref<8x22xf32, #tpu.memory_space<vmem>>, vector<8x22xf32>
    tpu.vector_store %arg6[%c0_40, %c0_41], %58 {strides = array<i32>} : memref<8x22xf32, #tpu.memory_space<vmem>>, vector<8x22xf32>,
    %c0_42 = arith.constant 0 : index
    %c3_43 = arith.constant 3 : index
    %60 = vector.load %arg5[%c0_42, %c3_43] : memref<8x22xf32, #tpu.memory_space<vmem>>, vector<8x1xf32>
    %61 = vector.shape_cast %60 : vector<8x1xf32> to vector<8x1xf32>
    %62 = vector.broadcast %61 : vector<8x1xf32> to vector<8x3xf32>
    %c0_44 = arith.constant 0 : index
    %c0_45 = arith.constant 0 : index
    %63 = vector.load %arg5[%c0_44, %c0_45] : memref<8x22xf32, #tpu.memory_space<vmem>>, vector<8x3xf32>
    tpu.vector_store %arg5[%c0_44, %c0_45], %62 {strides = array<i32>} : memref<8x22xf32, #tpu.memory_space<vmem>>, vector<8x3xf32>,
    %c0_46 = arith.constant 0 : index
    %c0_47 = arith.constant 0 : index
    %64 = vector.load %arg6[%c0_46, %c0_47] : memref<8x22xf32, #tpu.memory_space<vmem>>, vector<8x3xf32>
    tpu.vector_store %arg6[%c0_46, %c0_47], %62 {strides = array<i32>} : memref<8x22xf32, #tpu.memory_space<vmem>>, vector<8x3xf32>,
    %c0_48 = arith.constant 0 : index
    %c18 = arith.constant 18 : index
    %65 = vector.load %arg6[%c0_48, %c18] : memref<8x22xf32, #tpu.memory_space<vmem>>, vector<8x1xf32>
    %66 = vector.shape_cast %65 : vector<8x1xf32> to vector<8x1xf32>
    %67 = vector.broadcast %66 : vector<8x1xf32> to vector<8x3xf32>
    %c0_49 = arith.constant 0 : index
    %c19 = arith.constant 19 : index
    %68 = vector.load %arg5[%c0_49, %c19] : memref<8x22xf32, #tpu.memory_space<vmem>>, vector<8x3xf32>
    tpu.vector_store %arg5[%c0_49, %c19], %67 {strides = array<i32>} : memref<8x22xf32, #tpu.memory_space<vmem>>, vector<8x3xf32>,
    %c0_50 = arith.constant 0 : index
    %c19_51 = arith.constant 19 : index
    %69 = vector.load %arg6[%c0_50, %c19_51] : memref<8x22xf32, #tpu.memory_space<vmem>>, vector<8x3xf32>
    tpu.vector_store %arg6[%c0_50, %c19_51], %67 {strides = array<i32>} : memref<8x22xf32, #tpu.memory_space<vmem>>, vector<8x3xf32>,
    %c0_52 = arith.constant 0 : index
    %c0_53 = arith.constant 0 : index
    %70 = vector.load %arg6[%c0_52, %c0_53] : memref<8x22xf32, #tpu.memory_space<vmem>>, vector<8x16xf32>
    %c0_54 = arith.constant 0 : index
    %c6_55 = arith.constant 6 : index
    %71 = vector.load %arg5[%c0_54, %c6_55] : memref<8x22xf32, #tpu.memory_space<vmem>>, vector<8x16xf32>
    %72 = arith.addf %70, %71 : vector<8x16xf32>
    %cst_56 = arith.constant 0.00202896656 : f32
    %73 = vector.broadcast %cst_56 : f32 to vector<8x16xf32>
    %74 = arith.mulf %73, %72 : vector<8x16xf32>
    %c0_57 = arith.constant 0 : index
    %c1_58 = arith.constant 1 : index
    %75 = vector.load %arg6[%c0_57, %c1_58] : memref<8x22xf32, #tpu.memory_space<vmem>>, vector<8x16xf32>
    %c0_59 = arith.constant 0 : index
    %c5_60 = arith.constant 5 : index
    %76 = vector.load %arg5[%c0_59, %c5_60] : memref<8x22xf32, #tpu.memory_space<vmem>>, vector<8x16xf32>
    %77 = arith.addf %75, %76 : vector<8x16xf32>
    %cst_61 = arith.constant -0.0255434643 : f32
    %78 = vector.broadcast %cst_61 : f32 to vector<8x16xf32>
    %79 = arith.mulf %78, %77 : vector<8x16xf32>
    %80 = arith.addf %74, %79 : vector<8x16xf32>
    %c0_62 = arith.constant 0 : index
    %c2_63 = arith.constant 2 : index
    %81 = vector.load %arg6[%c0_62, %c2_63] : memref<8x22xf32, #tpu.memory_space<vmem>>, vector<8x16xf32>
    %c0_64 = arith.constant 0 : index
    %c4_65 = arith.constant 4 : index
    %82 = vector.load %arg5[%c0_64, %c4_65] : memref<8x22xf32, #tpu.memory_space<vmem>>, vector<8x16xf32>
    %83 = arith.addf %81, %82 : vector<8x16xf32>
    %cst_66 = arith.constant 0.128572613 : f32
    %84 = vector.broadcast %cst_66 : f32 to vector<8x16xf32>
    %85 = arith.mulf %84, %83 : vector<8x16xf32>
    %86 = arith.addf %80, %85 : vector<8x16xf32>
    %c0_67 = arith.constant 0 : index
    %c3_68 = arith.constant 3 : index
    %87 = vector.load %arg6[%c0_67, %c3_68] : memref<8x22xf32, #tpu.memory_space<vmem>>, vector<8x16xf32>
    %c0_69 = arith.constant 0 : index
    %c3_70 = arith.constant 3 : index
    %88 = vector.load %arg5[%c0_69, %c3_70] : memref<8x22xf32, #tpu.memory_space<vmem>>, vector<8x16xf32>
    %89 = arith.addf %87, %88 : vector<8x16xf32>
    %cst_71 = arith.constant 0.443209797 : f32
    %90 = vector.broadcast %cst_71 : f32 to vector<8x16xf32>
    %91 = arith.mulf %90, %89 : vector<8x16xf32>
    %92 = arith.addf %86, %91 : vector<8x16xf32>
    %c0_72 = arith.constant 0 : index
    %c4_73 = arith.constant 4 : index
    %93 = vector.load %arg6[%c0_72, %c4_73] : memref<8x22xf32, #tpu.memory_space<vmem>>, vector<8x16xf32>
    %c0_74 = arith.constant 0 : index
    %c2_75 = arith.constant 2 : index
    %94 = vector.load %arg5[%c0_74, %c2_75] : memref<8x22xf32, #tpu.memory_space<vmem>>, vector<8x16xf32>
    %95 = arith.addf %93, %94 : vector<8x16xf32>
    %cst_76 = arith.constant -0.0576573759 : f32
    %96 = vector.broadcast %cst_76 : f32 to vector<8x16xf32>
    %97 = arith.mulf %96, %95 : vector<8x16xf32>
    %98 = arith.addf %92, %97 : vector<8x16xf32>
    %c0_77 = arith.constant 0 : index
    %c5_78 = arith.constant 5 : index
    %99 = vector.load %arg6[%c0_77, %c5_78] : memref<8x22xf32, #tpu.memory_space<vmem>>, vector<8x16xf32>
    %c0_79 = arith.constant 0 : index
    %c1_80 = arith.constant 1 : index
    %100 = vector.load %arg5[%c0_79, %c1_80] : memref<8x22xf32, #tpu.memory_space<vmem>>, vector<8x16xf32>
    %101 = arith.addf %99, %100 : vector<8x16xf32>
    %cst_81 = arith.constant 0.00938946381 : f32
    %102 = vector.broadcast %cst_81 : f32 to vector<8x16xf32>
    %103 = arith.mulf %102, %101 : vector<8x16xf32>
    %104 = arith.addf %98, %103 : vector<8x16xf32>
    %c0_82 = arith.constant 0 : index
    %c0_83 = arith.constant 0 : index
    %105 = vector.load %arg3[%c0_82, %c0_83] : memref<8x16xf32, #tpu.memory_space<vmem>>, vector<8x16xf32>
    tpu.vector_store %arg3[%c0_82, %c0_83], %104 {strides = array<i32>} : memref<8x16xf32, #tpu.memory_space<vmem>>, vector<8x16xf32>,
    return
  }
  func.func @transform_0(%arg0: i32, %arg1: i32) -> (i32, i32) {
    %c0_i32 = arith.constant 0 : i32
    return %arg0, %arg1 : i32, i32
  }
  func.func @transform_1(%arg0: i32, %arg1: i32) -> (i32, i32) {
    %c0_i32 = arith.constant 0 : i32
    return %arg0, %arg1 : i32, i32
  }
}

</mosaic_0001>

<bundles_post_ra>
// kernel: tpu_custom_call.1
= control target key start
LH: loop header
LB: loop body
LE: loop exit
PB: predicated region body
PF: predicated region fallthrough
CT: control target
= control target key end

     0   :  { %6 = vsyncpa [#allocation6], 0  ;;  %s335_s0 = inlined_call_operand.hbm [shape: f32[8,16], index: 0, kind: input, shape index: {}]   ;;  %s336_s1 = inlined_call_operand.hbm [shape: f32[8,16], index: 1, kind: output, shape index: {}]  }
   0x1   :  { %7 = vsyncpa [#allocation7], 0  ;;  %s275_s6 = smov [#allocation5]   ;;  %s227_s10 = scalar_lea.hbm %s335_s0, 128 }
   0x2   :  { %s14_s7 = sshll.u32 %s275_s6, 4  ;;  %p228_p0 = scmp.ne.s32.totalorder %s335_s0, %s227_s10  ;;  %s15_s7 = int_to_ptr.vmem [resolvable:$true] %s14_s7 }
   0x3   :  { %p231_p1 = scmp.lt.u32.totalorder %s227_s10, %s335_s0 }
   0x5   :  { %p233_p2 = pnand %p231_p1, %p228_p0 }
   0x7   :  { %236 = shalt.err (!%p233_p2)
}
   0x8   :  { %s237_s15 = scalar_lea.vmem %s15_s7, 128  ;;  %p242_p4 = scmp.lt.s32.totalorder %s15_s7, %s15_s7 }
   0x9   :  { %p238_p3 = scmp.ne.s32.totalorder %s15_s7, %s237_s15  ;;  %p243_p5 = scmp.lt.s32.totalorder %s237_s15, %s237_s15 }
   0xb   :  { %p244_p6 = por %p243_p5, %p242_p4 }
   0xd   :  { %p245_p7 = pnand %p244_p6, %p238_p3 }
   0xf   :  { %248 = shalt.err (!%p245_p7)
}
  0x10   :  { %17 = dma.hbm_to_vmem [thread:$0]  %s335_s0, 128, %s15_s7, [#allocation6]  }
  0x11   :  { %271 = dma.done.wait [#allocation6], 128  }
  0x12   :  { %272 = vsyncadd [#allocation6], 4294967168  ;;  %v276_v0 = vmov 6   ;;  %v21_v1 = vld [vmem:[#allocation5] sm:$0xff]  ;;  %s277_s18 = smov 6   ;;  %vm26_vm0 = vcmask 179248  }
  0x13   :  { %218 = vset.pattern.permute.xlu0 %v276_v0  ;;  %v278_v4 = vmov 21   ;;  %vm34_vm1 = vcmask 48128   ;;  %vm42_vm2 = vcmask 228528   ;;  %s279_s0 = smov 3   ;;  %s280_s19 = smov 1   ;;  %v284_v27 = vmov 3  }
  0x14   :  { %23 = vrot.lane.b32.xlu0 %v21_v1, %s277_s18  ;;  %219 = vset.pattern.permute.xlu1 %v278_v4  ;;  %s281_s20 = smov 2   ;;  %s282_s21 = smov 5   ;;  %vm102_vm3 = vcmask 179200   ;;  %v287_v41 = vmov 18   ;;  %vm116_vm4 = vcmask 23552   ;;  %vm125_vm5 = vcmask 179352  }
  0x15   :  { %s283_s22 = smov 4   ;;  %s285_s23 = smov 123   ;;  %vm183_vm6 = vcmask 130048  }
  0x16   :  { %s286_s24 = smov 122   ;;  %s288_s25 = smov 126  }
  0x17   :  { %s289_s26 = smov 124   ;;  %s290_s27 = smov 127  }
  0x18   :  { %s291_s28 = smov 125   ;;  %s292_s29 = smov [#allocation8]  }
  0x19   :  { %s191_s30 = sshll.u32 %s292_s29, 4  ;;  %s192_s30 = int_to_ptr.vmem [resolvable:$true] %s191_s30 }
  0x1a   :  { %s249_s2 = scalar_lea.vmem %s192_s30, 128  ;;  %p254_p9 = scmp.lt.s32.totalorder %s192_s30, %s192_s30 }
  0x1b   :  { %p250_p8 = scmp.ne.s32.totalorder %s192_s30, %s249_s2  ;;  %p255_p10 = scmp.lt.s32.totalorder %s249_s2, %s249_s2 }
  0x1d   :  { %p256_p11 = por %p255_p10, %p254_p9 }
  0x1f   :  { %p257_p12 = pnand %p256_p11, %p250_p8 }
  0x86   :  { %v24_v2 = vpop.permute.xlu0 %23 }
  0x87   :  { %27 = vst.msk [vmem:[#allocation2] sm:$0xff] %vm26_vm0, %v24_v2 }
  0x8e   :  { %v28_v3 = vld [vmem:[#allocation2] sm:$0xff] }
  0x8f   :  { %31 = vperm.xlu0 %218, %v28_v3  }
  0x93   :  { %222 = vset.pattern.permute.xlu0 %v287_v41 }
 0x10e   :  { %v32_v5 = vpop.permute.xlu0 %31 }
 0x10f   :  { %35 = vst.msk [vmem:[#allocation2] sm:$0xff] %vm34_vm1, %v32_v5 }
 0x116   :  { %v36_v6 = vld [vmem:[#allocation2] sm:$0xff] }
 0x117   :  { %39 = vperm.xlu1 %219, %v36_v6  }
 0x11b   :  { %220 = vset.pattern.permute.xlu1 %v284_v27 }
 0x196   :  { %v40_v7 = vpop.permute.xlu1 %39 }
 0x197   :  { %43 = vst.msk [vmem:[#allocation2] sm:$0xff] %vm42_vm2, %v40_v7 }
 0x19e   :  { %v44_v8 = vld [vmem:[#allocation2] sm:$0xff] }
 0x19f   :  { %v65_v9 = vmul.f32 0.25714523, %v44_v8  ;;  %v47_v10 = vmul.f32 -0.11531475, %v44_v8  ;;  %v59_v11 = vmul.f32 0.8864196, %v44_v8 }
 0x1a0   :  { %v46_v12 = vmul.f32 0.004057933, %v44_v8  ;;  %v53_v13 = vmul.f32 -0.05108693, %v44_v8  ;;  %v45_v14 = vmul.f32 0.018778928, %v44_v8 }
 0x1a1   :  { %71 = vrot.lane.b32.xlu0 %v65_v9, %s279_s0  ;;  %49 = vrot.lane.b32.xlu1 %v47_v10, %s280_s19 }
 0x1a5   :  { %61 = vrot.lane.b32.xlu1 %v59_v11, %s281_s20  ;;  %88 = vrot.lane.b32.xlu0 %v46_v12, %s282_s21 }
 0x1a9   :  { %79 = vrot.lane.b32.xlu1 %v53_v13, %s283_s22  ;;  %67 = vrot.lane.b32.xlu0 %v65_v9, %s281_s20 }
 0x1ad   :  { %55 = vrot.lane.b32.xlu1 %v53_v13, %s280_s19  ;;  %83 = vrot.lane.b32.xlu0 %v47_v10, %s283_s22 }
 0x1b1   :  { %75 = vrot.lane.b32.xlu1 %v59_v11, %s279_s0  ;;  %93 = vrot.lane.b32.xlu0 %v45_v14, %s282_s21 }
 0x213   :  { %v72_v15 = vpop.permute.xlu0 %71  ;;  %v50_v16 = vpop.permute.xlu1 %49 }
 0x214   :  { %v52_v17 = vadd.f32 %v50_v16, %v45_v14 }
 0x217   :  { %v62_v18 = vpop.permute.xlu1 %61  ;;  %v89_v19 = vpop.permute.xlu0 %88 }
 0x218   :  { %v64_v20 = vadd.f32 %v62_v18, %v52_v17 }
 0x21a   :  { %v74_v21 = vadd.f32 %v72_v15, %v64_v20 }
 0x21b   :  { %v80_v22 = vpop.permute.xlu1 %79  ;;  %v68_v23 = vpop.permute.xlu0 %67 }
 0x21c   :  { %v82_v24 = vadd.f32 %v80_v22, %v74_v21 }
 0x21e   :  { %v91_v25 = vadd.f32 %v89_v19, %v82_v24 }
 0x21f   :  { %v56_v26 = vpop.permute.xlu1 %55  ;;  %v84_v29 = vpop.permute.xlu0 %83 }
 0x220   :  { %223 = vtanh.f32 %v91_v25  ;;  %v58_v28 = vadd.f32 %v56_v26, %v46_v12 }
 0x222   :  { %v70_v30 = vadd.f32 %v68_v23, %v58_v28 }
 0x223   :  { %v76_v31 = vpop.permute.xlu1 %75  ;;  %v94_v34 = vpop.permute.xlu0 %93 }
 0x224   :  { %v78_v32 = vadd.f32 %v76_v31, %v70_v30 }
 0x226   :  { %v86_v33 = vadd.f32 %v84_v29, %v78_v32 }
 0x228   :  { %v96_v35 = vadd.f32 %v94_v34, %v86_v33 }
 0x22a   :  { %v224_v36 = vpop.eup %223  ;;  %225 = vtanh.f32 %v96_v35 }
 0x22b   :  { %99 = vrot.lane.b32.xlu1 %v224_v36, %s285_s23 }
 0x234   :  { %v226_v37 = vpop.eup %225 }
 0x235   :  { %106 = vrot.lane.b32.xlu0 %v226_v37, %s286_s24 }
 0x29d   :  { %v100_v38 = vpop.permute.xlu1 %99 }
 0x29e   :  { %103 = vst.msk [vmem:[#allocation3] sm:$0xff] %vm102_vm3, %v100_v38 }
 0x2a5   :  { %v110_v39 = vld [vmem:[#allocation3] sm:$0xff] }
 0x2a6   :  { %113 = vperm.xlu1 %220, %v110_v39  }
 0x2a7   :  { %v107_v40 = vpop.permute.xlu0 %106 }
 0x2a8   :  { %109 = vst.msk [vmem:[#allocation4] sm:$0xff] %vm102_vm3, %v107_v40 }
 0x2aa   :  { %221 = vset.pattern.permute.xlu1 %v287_v41 }
 0x325   :  { %v114_v42 = vpop.permute.xlu1 %113 }
 0x326   :  { %117 = vst.msk [vmem:[#allocation3] sm:$0xff] %vm116_vm4, %v114_v42  ;;  %118 = vst.msk [vmem:[#allocation4] sm:$0xff] %vm116_vm4, %v114_v42 }
 0x32d   :  { %v119_v43 = vld [vmem:[#allocation4] sm:$0xff] }
 0x32e   :  { %122 = vperm.xlu1 %221, %v119_v43  }
 0x3ad   :  { %v123_v44 = vpop.permute.xlu1 %122 }
 0x3ae   :  { %126 = vst.msk [vmem:[#allocation3] sm:$0xff] %vm125_vm5, %v123_v44  ;;  %127 = vst.msk [vmem:[#allocation4] sm:$0xff] %vm125_vm5, %v123_v44 }
 0x3b5   :  { %v129_v45 = vld [vmem:[#allocation3] sm:$0xff]  ;;  %v128_v46 = vld [vmem:[#allocation4] sm:$0xff] }
 0x3b6   :  { %146 = vrot.lane.b32.xlu1 %v129_v45, %s288_s25  ;;  %136 = vrot.lane.b32.xlu0 %v129_v45, %s289_s26  ;;  %v156_v53 = vadd.f32 %v129_v45, %v128_v46 }
 0x3b8   :  { %v157_v59 = vmul.f32 0.4432098, %v156_v53 }
 0x3ba   :  { %173 = vrot.lane.b32.xlu1 %v129_v45, %s283_s22  ;;  %163 = vrot.lane.b32.xlu0 %v129_v45, %s281_s20 }
 0x3be   :  { %131 = vrot.lane.b32.xlu0 %v129_v45, %s286_s24 }
 0x428   :  { %v147_v47 = vpop.permute.xlu1 %146  ;;  %v137_v48 = vpop.permute.xlu0 %136 }
 0x429   :  { %v149_v49 = vadd.f32 %v147_v47, %v128_v46  ;;  %v139_v50 = vadd.f32 %v137_v48, %v128_v46 }
 0x42b   :  { %v150_v51 = vmul.f32 0.12857261, %v149_v49  ;;  %v140_v52 = vmul.f32 -0.025543464, %v139_v50 }
 0x42c   :  { %v174_v54 = vpop.permute.xlu1 %173  ;;  %v164_v55 = vpop.permute.xlu0 %163 }
 0x42d   :  { %v166_v56 = vadd.f32 %v164_v55, %v128_v46  ;;  %152 = vrot.lane.b32.xlu0 %v150_v51, %s288_s25  ;;  %142 = vrot.lane.b32.xlu1 %v140_v52, %s290_s27  ;;  %v176_v57 = vadd.f32 %v174_v54, %v128_v46 }
 0x42f   :  { %v167_v58 = vmul.f32 -0.057657376, %v166_v56  ;;  %v177_v60 = vmul.f32 0.009389464, %v176_v57 }
 0x430   :  { %v132_v61 = vpop.permute.xlu0 %131 }
 0x431   :  { %169 = vrot.lane.b32.xlu0 %v167_v58, %s289_s26  ;;  %159 = vrot.lane.b32.xlu1 %v157_v59, %s291_s28  ;;  %v134_v62 = vadd.f32 %v132_v61, %v128_v46 }
 0x433   :  { %v135_v63 = vmul.f32 0.0020289666, %v134_v62 }
 0x435   :  { %179 = vrot.lane.b32.xlu1 %v177_v60, %s285_s23 }
 0x49f   :  { %v143_v0 = vpop.permute.xlu1 %142  ;;  %v153_v1 = vpop.permute.xlu0 %152 }
 0x4a0   :  { %v145_v2 = vadd.f32 %v143_v0, %v135_v63 }
 0x4a2   :  { %v155_v3 = vadd.f32 %v153_v1, %v145_v2 }
 0x4a3   :  { %v160_v4 = vpop.permute.xlu1 %159  ;;  %v170_v6 = vpop.permute.xlu0 %169 }
 0x4a4   :  { %v162_v5 = vadd.f32 %v160_v4, %v155_v3 }
 0x4a6   :  { %v172_v7 = vadd.f32 %v170_v6, %v162_v5 }
 0x4a7   :  { %v180_v8 = vpop.permute.xlu1 %179 }
 0x4a8   :  { %v182_v9 = vadd.f32 %v180_v8, %v172_v7 }
 0x4aa   :  { %184 = vst.msk [vmem:[#allocation8] sm:$0xff] %vm183_vm6, %v182_v9 }
 0x4ab   :  { %260 = shalt.err (!%p257_p12)
}
 0x4ac   :  { %s261_s5 = scalar_lea.hbm %s336_s1, 128 }
 0x4ad   :  { %p262_p13 = scmp.ne.s32.totalorder %s336_s1, %s261_s5  ;;  %p265_p0 = scmp.lt.u32.totalorder %s261_s5, %s336_s1 }
 0x4af   :  { %p267_p1 = pnand %p265_p0, %p262_p13 }
 0x4b1   :  { %270 = shalt.err (!%p267_p1)
}
 0x4b2   :  { %194 = dma.vmem_to_hbm [thread:$0]  %s192_s30, 128, %s336_s1, [#allocation7]  }
 0x4b3   :  { %273 = dma.done.wait [#allocation7], 128  }
 0x4b4   :  { %274 = vsyncadd [#allocation7], 4294967168 }
 0x4b5   :  { %198 = vsyncpa [#allocation6], 1 }
 0x4b6   :  { %199 = vsyncpa [#allocation7], 1 }

</bundles_post_ra>
